<compile_context>
chip_gen: v5e
topology: v5e:2x2
jax: 0.10.0
libtpu: 0.0.40
codegen_flags: <defaults>
</compile_context>

<pallas_src>
import jax
import jax.numpy as jnp
from jax.experimental import pallas as pl
from jax.experimental.pallas import tpu as pltpu

_LANE = 128


def _round_up(n, m):
    return ((n + m - 1) // m) * m


def _leaky_relu_03(h):
    return jnp.where(h > 0, h, 0.3 * h)


def _make_kernel(final_reduce):
    def kernel(x_ref, c_ref, r_ref,
               w1x_ref, w1c_ref, w1r_ref,
               w2_ref, w3_ref, w4_ref, b_ref, o_ref):
        """Fused 4x (Linear + LeakyReLU(0.3)) on one batch tile; weights VMEM-resident."""
        hp = w2_ref.shape[0]                      # padded hidden width (static)

        x = x_ref[...].astype(jnp.float32)
        c = c_ref[...].astype(jnp.float32)
        r = r_ref[...].astype(jnp.float32)

        # Layer 1: [x | c | r] @ W1 + b1, with the concat fused into split
        # matmuls and a rank-1 broadcast term for the single r column (VPU).
        h = jnp.dot(x, w1x_ref[...], preferred_element_type=jnp.float32)
        h = h + jnp.dot(c, w1c_ref[...], preferred_element_type=jnp.float32)
        h = h + r * w1r_ref[...]
        h = _leaky_relu_03(h + b_ref[0:1, :hp])

        # Layers 2/3: lane-dense (128-padded) MXU matmuls, f32 accumulation.
        h = _leaky_relu_03(
            jnp.dot(h, w2_ref[...], preferred_element_type=jnp.float32)
            + b_ref[1:2, :hp])
        h = _leaky_relu_03(
            jnp.dot(h, w3_ref[...], preferred_element_type=jnp.float32)
            + b_ref[2:3, :hp])

        if final_reduce:
            # Layer 4 (hidden -> 1): broadcast-mul (VPU) + cross-lane sum (XLU)
            # instead of a 1-wide MXU matmul (avoids MXU drain + masked layout).
            y = jnp.sum(h * w4_ref[...], axis=-1, keepdims=True)
            y = y + b_ref[3:4, 0:1]
        else:
            out_pad = w4_ref.shape[1]
            y = (jnp.dot(h, w4_ref[...], preferred_element_type=jnp.float32)
                 + b_ref[3:4, :out_pad])

        o_ref[...] = _leaky_relu_03(y).astype(o_ref.dtype)

    return kernel


def _pack_params(params, input_dim, num_classes):
    """Split W1 by input stream and zero-pad everything to lane-dense shapes."""
    w1, w2, w3, w4 = params["w1"], params["w2"], params["w3"], params["w4"]
    b1, b2, b3, b4 = params["b1"], params["b2"], params["b3"], params["b4"]
    h1, h2, h3 = w1.shape[1], w2.shape[1], w3.shape[1]
    d_out = w4.shape[1]

    hp = max(_round_up(max(h1, h2, h3), _LANE), _LANE)
    final_reduce = (d_out == 1)
    out_pad = 1 if final_reduce else _round_up(d_out, _LANE)
    bias_w = max(hp, out_pad)

    def pad2(w, rows, cols):
        w = w.astype(jnp.float32)
        return jnp.pad(w, ((0, rows - w.shape[0]), (0, cols - w.shape[1])))

    w1x = pad2(w1[:input_dim], input_dim, hp)
    w1c = pad2(w1[input_dim:input_dim + num_classes], num_classes, hp)
    w1r = pad2(w1[input_dim + num_classes:], 1, hp)
    w2p = pad2(w2, hp, hp)
    w3p = pad2(w3, hp, hp)
    if final_reduce:
        w4p = pad2(w4.T, 1, hp)          # (1, hp) row for the VPU/XLU reduction
    else:
        w4p = pad2(w4, hp, out_pad)

    b = jnp.zeros((4, bias_w), jnp.float32)
    b = b.at[0, :h1].set(b1.reshape(-1).astype(jnp.float32))
    b = b.at[1, :h2].set(b2.reshape(-1).astype(jnp.float32))
    b = b.at[2, :h3].set(b3.reshape(-1).astype(jnp.float32))
    b = b.at[3, :d_out].set(b4.reshape(-1).astype(jnp.float32))

    return (w1x, w1c, w1r, w2p, w3p, w4p, b), final_reduce, hp, out_pad, d_out


def discriminator_minus1_forward(x, c, r, params, *, batch_tile=None):
    """Forward pass matching DiscriminatorMinus1.forward.

    x: (B, input_dim), c: (B, num_classes) (any dtype), r: (B, 1) (any dtype).
    params: dict w1..w4 stored as (in_features, out_features), b1..b4 (1, out).
    """
    B = x.shape[0]
    x = x.reshape(B, -1)
    c = c.reshape(B, -1)
    r = r.reshape(B, -1)
    input_dim = x.shape[1]
    num_classes = c.shape[1]

    (packed, final_reduce, hp, out_pad, d_out) = (
        _pack_params(params, input_dim, num_classes))
    w1x, w1c, w1r, w2p, w3p, w4p, b = packed
    out_w = 1 if final_reduce else out_pad

    # --- batch tiling: fixed-size tile (<=512, multiple of 8), padded grid ---
    if batch_tile is None:
        batch_tile = 512
    batch_tile = min(batch_tile, B)
    if batch_tile >= 8:
        batch_tile -= batch_tile % 8
    batch_tile = max(batch_tile, 1)
    Bp = _round_up(B, batch_tile)
    if Bp != B:
        pad_rows = Bp - B
        x = jnp.pad(x, ((0, pad_rows), (0, 0)))
        c = jnp.pad(c, ((0, pad_rows), (0, 0)))
        r = jnp.pad(r, ((0, pad_rows), (0, 0)))
    grid = (Bp // batch_tile,)

    def full(a):  # weight/bias blocks: full array, same block every grid step
        return pl.BlockSpec(a.shape, lambda i: (0, 0))

    flops = 2 * Bp * ((input_dim + num_classes + 1) * hp
                      + 2 * hp * hp + hp * out_w)
    weight_bytes = 4 * (w1x.size + w1c.size + w1r.size
                        + w2p.size + w3p.size + w4p.size + b.size)
    bytes_accessed = (Bp * (input_dim * x.dtype.itemsize
                            + num_classes * c.dtype.itemsize
                            + r.dtype.itemsize)
                      + weight_bytes + Bp * out_w * 4)

    out = pl.pallas_call(
        _make_kernel(final_reduce),
        out_shape=jax.ShapeDtypeStruct((Bp, out_w), jnp.float32),
        grid_spec=pltpu.PrefetchScalarGridSpec(
            num_scalar_prefetch=0,
            grid=grid,
            in_specs=[
                pl.BlockSpec((batch_tile, input_dim), lambda i: (i, 0)),
                pl.BlockSpec((batch_tile, num_classes), lambda i: (i, 0)),
                pl.BlockSpec((batch_tile, 1), lambda i: (i, 0)),
                full(w1x), full(w1c), full(w1r),
                full(w2p), full(w3p), full(w4p), full(b),
            ],
            out_specs=pl.BlockSpec((batch_tile, out_w), lambda i: (i, 0)),
        ),
        compiler_params=pltpu.CompilerParams(
            dimension_semantics=("parallel",),
            vmem_limit_bytes=32 * 1024 * 1024,
        ),
        cost_estimate=pl.CostEstimate(
            flops=int(flops), transcendentals=0,
            bytes_accessed=int(bytes_accessed)),
    )(x, c, r, w1x, w1c, w1r, w2p, w3p, w4p, b)

    return out[:B, :d_out]


def init_params(key, in_dim, d_hid):
    """Synthetic init mirroring nn.Linear shapes (std=0.02 normal weights,
    zero biases); weights stored transposed (in, out) for v @ W."""
    dims = [in_dim] + list(d_hid)
    params = {}
    for li in range(4):
        key, kw = jax.random.split(key)
        fan_in, fan_out = dims[li], dims[li + 1]
        params[f"w{li+1}"] = 0.02 * jax.random.normal(
            kw, (fan_in, fan_out), dtype=jnp.float32)
        params[f"b{li+1}"] = jnp.zeros((1, fan_out), dtype=jnp.float32)
    return params


if __name__ == "__main__":
    # Small shapes consistent with the module:
    #   input_dim=32, num_classes=4, extra r column=1 -> concat dim = 37
    #   d_hid = [64, 32, 16, 1]
    B, input_dim, num_classes = 8, 32, 4
    d_hid = [64, 32, 16, 1]
    in_dim = input_dim + num_classes + 1

    key = jax.random.PRNGKey(0)
    kx, kc, kr, kp = jax.random.split(key, 4)
    x = jax.random.normal(kx, (B, input_dim), dtype=jnp.float32)
    # c is a one-hot class matrix (int -> .float() in the torch forward)
    c = jax.nn.one_hot(
        jax.random.randint(kc, (B,), 0, num_classes), num_classes).astype(jnp.int32)
    r = jax.random.uniform(kr, (B, 1), dtype=jnp.float32)

    params = init_params(kp, in_dim, d_hid)

    y = discriminator_minus1_forward(x, c, r, params)
    y = jax.block_until_ready(y)

    # Pure-JAX reference (unpadded, exact f32 matmuls) for the fused kernel.
    v = jnp.concatenate([x, c.astype(jnp.float32), r], axis=1)
    h = v
    for li in range(4):
        h = jnp.dot(h, params[f"w{li+1}"],
                    precision=jax.lax.Precision.HIGHEST) + params[f"b{li+1}"]
        h = jnp.where(h > 0, h, 0.3 * h)

    assert y.shape == (B, d_hid[-1])
    assert jnp.allclose(y, h, atol=2e-5, rtol=1e-4), float(jnp.max(jnp.abs(y - h)))

    print("KERNEL_OK")
</pallas_src>

<mosaic_0001>
module attributes {stable_mosaic.version = 11 : i64} {
  func.func @kernel(%arg0: i32, %arg1: memref<8x32xf32, #tpu.memory_space<vmem>>, %arg2: memref<8x4xi32, #tpu.memory_space<vmem>>, %arg3: memref<8x1xf32, #tpu.memory_space<vmem>>, %arg4: memref<32x128xf32, #tpu.memory_space<vmem>>, %arg5: memref<4x128xf32, #tpu.memory_space<vmem>>, %arg6: memref<1x128xf32, #tpu.memory_space<vmem>>, %arg7: memref<128x128xf32, #tpu.memory_space<vmem>>, %arg8: memref<128x128xf32, #tpu.memory_space<vmem>>, %arg9: memref<1x128xf32, #tpu.memory_space<vmem>>, %arg10: memref<4x128xf32, #tpu.memory_space<vmem>>, %arg11: memref<8x1xf32, #tpu.memory_space<vmem>>) attributes {dimension_semantics = [#tpu.dimension_semantics<parallel>], iteration_bounds = array<i64: 1>, scalar_prefetch = 0 : i64, scratch_operands = 0 : i64, tpu.core_type = #tpu.core_type<tc>, window_params = [{transform_indices = @transform_0, window_bounds = array<i64: 8, 32>}, {transform_indices = @transform_1, window_bounds = array<i64: 8, 4>}, {transform_indices = @transform_2, window_bounds = array<i64: 8, 1>}, {pipeline_mode = #tpu.pipeline_mode<synchronous>, transform_indices = @transform_3, window_bounds = array<i64: 32, 128>}, {pipeline_mode = #tpu.pipeline_mode<synchronous>, transform_indices = @transform_4, window_bounds = array<i64: 4, 128>}, {pipeline_mode = #tpu.pipeline_mode<synchronous>, transform_indices = @transform_5, window_bounds = array<i64: 1, 128>}, {pipeline_mode = #tpu.pipeline_mode<synchronous>, transform_indices = @transform_6, window_bounds = array<i64: 128, 128>}, {pipeline_mode = #tpu.pipeline_mode<synchronous>, transform_indices = @transform_7, window_bounds = array<i64: 128, 128>}, {pipeline_mode = #tpu.pipeline_mode<synchronous>, transform_indices = @transform_8, window_bounds = array<i64: 1, 128>}, {pipeline_mode = #tpu.pipeline_mode<synchronous>, transform_indices = @transform_9, window_bounds = array<i64: 4, 128>}, {transform_indices = @transform_10, window_bounds = array<i64: 8, 1>}]} {
    %c0 = arith.constant 0 : index
    %c0_0 = arith.constant 0 : index
    %0 = vector.load %arg1[%c0, %c0_0] : memref<8x32xf32, #tpu.memory_space<vmem>>, vector<8x32xf32>
    %c0_1 = arith.constant 0 : index
    %c0_2 = arith.constant 0 : index
    %1 = vector.load %arg2[%c0_1, %c0_2] : memref<8x4xi32, #tpu.memory_space<vmem>>, vector<8x4xi32>
    %2 = arith.sitofp %1 : vector<8x4xi32> to vector<8x4xf32>
    %c0_3 = arith.constant 0 : index
    %c0_4 = arith.constant 0 : index
    %3 = vector.load %arg3[%c0_3, %c0_4] : memref<8x1xf32, #tpu.memory_space<vmem>>, vector<8x1xf32>
    %c0_5 = arith.constant 0 : index
    %c0_6 = arith.constant 0 : index
    %4 = vector.load %arg4[%c0_5, %c0_6] : memref<32x128xf32, #tpu.memory_space<vmem>>, vector<32x128xf32>
    %cst = arith.constant dense<0.000000e+00> : vector<8x128xf32>
    %5 = tpu.matmul %0, %4, %cst {dimension_numbers = #tpu.dot_dimension_numbers<[1], [0], [0], [1], [0, 0, 1, 1], [], []>} : vector<8x32xf32>, vector<32x128xf32>, vector<8x128xf32> -> vector<8x128xf32>
    %c0_7 = arith.constant 0 : index
    %c0_8 = arith.constant 0 : index
    %6 = vector.load %arg5[%c0_7, %c0_8] : memref<4x128xf32, #tpu.memory_space<vmem>>, vector<4x128xf32>
    %cst_9 = arith.constant dense<0.000000e+00> : vector<8x128xf32>
    %7 = tpu.matmul %2, %6, %cst_9 {dimension_numbers = #tpu.dot_dimension_numbers<[1], [0], [0], [1], [0, 0, 1, 1], [], []>} : vector<8x4xf32>, vector<4x128xf32>, vector<8x128xf32> -> vector<8x128xf32>
    %8 = arith.addf %5, %7 : vector<8x128xf32>
    %c0_10 = arith.constant 0 : index
    %c0_11 = arith.constant 0 : index
    %9 = vector.load %arg6[%c0_10, %c0_11] : memref<1x128xf32, #tpu.memory_space<vmem>>, vector<1x128xf32>
    %10 = vector.broadcast %3 : vector<8x1xf32> to vector<8x128xf32>
    %11 = vector.broadcast %9 : vector<1x128xf32> to vector<8x128xf32>
    %12 = arith.mulf %10, %11 : vector<8x128xf32>
    %13 = arith.addf %8, %12 : vector<8x128xf32>
    %c0_12 = arith.constant 0 : index
    %c0_13 = arith.constant 0 : index
    %14 = vector.load %arg10[%c0_12, %c0_13] : memref<4x128xf32, #tpu.memory_space<vmem>>, vector<1x128xf32>
    %15 = vector.broadcast %14 : vector<1x128xf32> to vector<8x128xf32>
    %16 = arith.addf %13, %15 : vector<8x128xf32>
    %cst_14 = arith.constant 0.000000e+00 : f32
    %17 = vector.broadcast %cst_14 : f32 to vector<8x128xf32>
    %18 = arith.cmpf ogt, %16, %17 : vector<8x128xf32>
    %cst_15 = arith.constant 3.000000e-01 : f32
    %19 = vector.broadcast %cst_15 : f32 to vector<8x128xf32>
    %20 = arith.mulf %19, %16 : vector<8x128xf32>
    %21 = arith.select %18, %16, %20 : vector<8x128xi1>, vector<8x128xf32>
    %c0_16 = arith.constant 0 : index
    %c0_17 = arith.constant 0 : index
    %22 = vector.load %arg7[%c0_16, %c0_17] : memref<128x128xf32, #tpu.memory_space<vmem>>, vector<128x128xf32>
    %cst_18 = arith.constant dense<0.000000e+00> : vector<8x128xf32>
    %23 = tpu.matmul %21, %22, %cst_18 {dimension_numbers = #tpu.dot_dimension_numbers<[1], [0], [0], [1], [0, 0, 1, 1], [], []>} : vector<8x128xf32>, vector<128x128xf32>, vector<8x128xf32> -> vector<8x128xf32>
    %c1 = arith.constant 1 : index
    %c0_19 = arith.constant 0 : index
    %24 = vector.load %arg10[%c1, %c0_19] : memref<4x128xf32, #tpu.memory_space<vmem>>, vector<1x128xf32>
    %25 = vector.broadcast %24 : vector<1x128xf32> to vector<8x128xf32>
    %26 = arith.addf %23, %25 : vector<8x128xf32>
    %cst_20 = arith.constant 0.000000e+00 : f32
    %27 = vector.broadcast %cst_20 : f32 to vector<8x128xf32>
    %28 = arith.cmpf ogt, %26, %27 : vector<8x128xf32>
    %cst_21 = arith.constant 3.000000e-01 : f32
    %29 = vector.broadcast %cst_21 : f32 to vector<8x128xf32>
    %30 = arith.mulf %29, %26 : vector<8x128xf32>
    %31 = arith.select %28, %26, %30 : vector<8x128xi1>, vector<8x128xf32>
    %c0_22 = arith.constant 0 : index
    %c0_23 = arith.constant 0 : index
    %32 = vector.load %arg8[%c0_22, %c0_23] : memref<128x128xf32, #tpu.memory_space<vmem>>, vector<128x128xf32>
    %cst_24 = arith.constant dense<0.000000e+00> : vector<8x128xf32>
    %33 = tpu.matmul %31, %32, %cst_24 {dimension_numbers = #tpu.dot_dimension_numbers<[1], [0], [0], [1], [0, 0, 1, 1], [], []>} : vector<8x128xf32>, vector<128x128xf32>, vector<8x128xf32> -> vector<8x128xf32>
    %c2 = arith.constant 2 : index
    %c0_25 = arith.constant 0 : index
    %34 = vector.load %arg10[%c2, %c0_25] : memref<4x128xf32, #tpu.memory_space<vmem>>, vector<1x128xf32>
    %35 = vector.broadcast %34 : vector<1x128xf32> to vector<8x128xf32>
    %36 = arith.addf %33, %35 : vector<8x128xf32>
    %cst_26 = arith.constant 0.000000e+00 : f32
    %37 = vector.broadcast %cst_26 : f32 to vector<8x128xf32>
    %38 = arith.cmpf ogt, %36, %37 : vector<8x128xf32>
    %cst_27 = arith.constant 3.000000e-01 : f32
    %39 = vector.broadcast %cst_27 : f32 to vector<8x128xf32>
    %40 = arith.mulf %39, %36 : vector<8x128xf32>
    %41 = arith.select %38, %36, %40 : vector<8x128xi1>, vector<8x128xf32>
    %c0_28 = arith.constant 0 : index
    %c0_29 = arith.constant 0 : index
    %42 = vector.load %arg9[%c0_28, %c0_29] : memref<1x128xf32, #tpu.memory_space<vmem>>, vector<1x128xf32>
    %43 = vector.broadcast %42 : vector<1x128xf32> to vector<8x128xf32>
    %44 = arith.mulf %41, %43 : vector<8x128xf32>
    %cst_30 = arith.constant dense<0.000000e+00> : vector<8xf32>
    %45 = vector.multi_reduction <add>, %44, %cst_30 [1] : vector<8x128xf32> to vector<8xf32>
    %46 = vector.shape_cast %45 : vector<8xf32> to vector<8x1xf32>
    %c3 = arith.constant 3 : index
    %c0_31 = arith.constant 0 : index
    %47 = vector.load %arg10[%c3, %c0_31] : memref<4x128xf32, #tpu.memory_space<vmem>>, vector<1x1xf32>
    %48 = vector.broadcast %47 : vector<1x1xf32> to vector<8x1xf32>
    %49 = arith.addf %46, %48 : vector<8x1xf32>
    %cst_32 = arith.constant 0.000000e+00 : f32
    %50 = vector.broadcast %cst_32 : f32 to vector<8x1xf32>
    %51 = arith.cmpf ogt, %49, %50 : vector<8x1xf32>
    %cst_33 = arith.constant 3.000000e-01 : f32
    %52 = vector.broadcast %cst_33 : f32 to vector<8x1xf32>
    %53 = arith.mulf %52, %49 : vector<8x1xf32>
    %54 = arith.select %51, %49, %53 : vector<8x1xi1>, vector<8x1xf32>
    %c0_34 = arith.constant 0 : index
    %c0_35 = arith.constant 0 : index
    %55 = vector.load %arg11[%c0_34, %c0_35] : memref<8x1xf32, #tpu.memory_space<vmem>>, vector<8x1xf32>
    tpu.vector_store %arg11[%c0_34, %c0_35], %54 {strides = array<i32>} : memref<8x1xf32, #tpu.memory_space<vmem>>, vector<8x1xf32>,
    return
  }
  func.func @transform_0(%arg0: i32) -> (i32, i32) {
    %c0_i32 = arith.constant 0 : i32
    %c0_i32_0 = arith.constant 0 : i32
    return %arg0, %c0_i32 : i32, i32
  }
  func.func @transform_1(%arg0: i32) -> (i32, i32) {
    %c0_i32 = arith.constant 0 : i32
    %c0_i32_0 = arith.constant 0 : i32
    return %arg0, %c0_i32 : i32, i32
  }
  func.func @transform_2(%arg0: i32) -> (i32, i32) {
    %c0_i32 = arith.constant 0 : i32
    %c0_i32_0 = arith.constant 0 : i32
    return %arg0, %c0_i32 : i32, i32
  }
  func.func @transform_3(%arg0: i32) -> (i32, i32) {
    %c0_i32 = arith.constant 0 : i32
    %c0_i32_0 = arith.constant 0 : i32
    %c0_i32_1 = arith.constant 0 : i32
    return %c0_i32, %c0_i32_0 : i32, i32
  }
  func.func @transform_4(%arg0: i32) -> (i32, i32) {
    %c0_i32 = arith.constant 0 : i32
    %c0_i32_0 = arith.constant 0 : i32
    %c0_i32_1 = arith.constant 0 : i32
    return %c0_i32, %c0_i32_0 : i32, i32
  }
  func.func @transform_5(%arg0: i32) -> (i32, i32) {
    %c0_i32 = arith.constant 0 : i32
    %c0_i32_0 = arith.constant 0 : i32
    %c0_i32_1 = arith.constant 0 : i32
    return %c0_i32, %c0_i32_0 : i32, i32
  }
  func.func @transform_6(%arg0: i32) -> (i32, i32) {
    %c0_i32 = arith.constant 0 : i32
    %c0_i32_0 = arith.constant 0 : i32
    %c0_i32_1 = arith.constant 0 : i32
    return %c0_i32, %c0_i32_0 : i32, i32
  }
  func.func @transform_7(%arg0: i32) -> (i32, i32) {
    %c0_i32 = arith.constant 0 : i32
    %c0_i32_0 = arith.constant 0 : i32
    %c0_i32_1 = arith.constant 0 : i32
    return %c0_i32, %c0_i32_0 : i32, i32
  }
  func.func @transform_8(%arg0: i32) -> (i32, i32) {
    %c0_i32 = arith.constant 0 : i32
    %c0_i32_0 = arith.constant 0 : i32
    %c0_i32_1 = arith.constant 0 : i32
    return %c0_i32, %c0_i32_0 : i32, i32
  }
  func.func @transform_9(%arg0: i32) -> (i32, i32) {
    %c0_i32 = arith.constant 0 : i32
    %c0_i32_0 = arith.constant 0 : i32
    %c0_i32_1 = arith.constant 0 : i32
    return %c0_i32, %c0_i32_0 : i32, i32
  }
  func.func @transform_10(%arg0: i32) -> (i32, i32) {
    %c0_i32 = arith.constant 0 : i32
    %c0_i32_0 = arith.constant 0 : i32
    return %arg0, %c0_i32 : i32, i32
  }
}

</mosaic_0001>

<bundles_post_ra>
// kernel: tpu_custom_call.1
= control target key start
LH: loop header
LB: loop body
LE: loop exit
PB: predicated region body
PF: predicated region fallthrough
CT: control target
= control target key end

     0   :  { %15 = vsyncpa [#allocation3], 0  ;;  %s458_s0 = inlined_call_operand.vmem [shape: f32[8,32], index: 0, kind: input, shape index: {}]   ;;  %s459_s1 = inlined_call_operand.vmem [shape: s32[8,4], index: 1, kind: input, shape index: {}]   ;;  %s460_s2 = inlined_call_operand.vmem [shape: f32[8,1], index: 2, kind: input, shape index: {}]   ;;  %s461_s3 = inlined_call_operand.hbm [shape: f32[32,128], index: 3, kind: input, shape index: {}]   ;;  %s462_s4 = inlined_call_operand.vmem [shape: f32[4,128], index: 4, kind: input, shape index: {}]   ;;  %s463_s5 = inlined_call_operand.vmem [shape: f32[1,128], index: 5, kind: input, shape index: {}]   ;;  %s464_s6 = inlined_call_operand.hbm [shape: f32[128,128], index: 6, kind: input, shape index: {}]   ;;  %s465_s7 = inlined_call_operand.hbm [shape: f32[128,128], index: 7, kind: input, shape index: {}]   ;;  %s466_s8 = inlined_call_operand.vmem [shape: f32[1,128], index: 8, kind: input, shape index: {}]   ;;  %s467_s9 = inlined_call_operand.vmem [shape: f32[4,128], index: 9, kind: input, shape index: {}]   ;;  %s468_s10 = inlined_call_operand.vmem [shape: f32[8,1], index: 10, kind: output, shape index: {}]  }
   0x1   :  { %16 = vsyncpa [#allocation5], 0  ;;  %s44_s15 = sshll.u32 %s464_s6, 4  ;;  %s355_s16 = smov [#allocation4]   ;;  %s45_s15 = int_to_ptr.hbm [resolvable:$true] %s44_s15 }
   0x2   :  { %s46_s17 = sshll.u32 %s355_s16, 4  ;;  %s27_s20 = sshll.u32 %s461_s3, 4  ;;  %s47_s17 = int_to_ptr.vmem [resolvable:$true] %s46_s17  ;;  %s28_s20 = int_to_ptr.hbm [resolvable:$true] %s27_s20 }
   0x3   :  { %s356_s21 = smov 128   ;;  %s357_s22 = smov 8  }
   0x4   :  { %52 = dma.hbm_to_vmem [thread:$0]  %s45_s15, 2048, %s47_s17, [#allocation5], %s356_s21, %s356_s21, %s357_s22  }
   0x5   :  { %s358_s23 = smov [#allocation2]   ;;  %s57_s27 = sshll.u32 %s465_s7, 4  ;;  %s58_s27 = int_to_ptr.hbm [resolvable:$true] %s57_s27 }
   0x6   :  { %s29_s24 = sshll.u32 %s358_s23, 4  ;;  %s359_s6 = smov [#allocation6]   ;;  %s30_s24 = int_to_ptr.vmem [resolvable:$true] %s29_s24 }
   0x7   :  { %35 = dma.hbm_to_vmem [thread:$0]  %s28_s20, 512, %s30_s24, [#allocation3], %s356_s21, %s356_s21, %s357_s22  }
   0x8   :  { %s59_s28 = sshll.u32 %s359_s6, 4  ;;  %s60_s28 = int_to_ptr.vmem [resolvable:$true] %s59_s28 }
   0x9   :  { %65 = dma.hbm_to_vmem [thread:$0]  %s58_s27, 2048, %s60_s28, [#allocation5], %s356_s21, %s356_s21, %s357_s22  }
   0xa   :  { %351 = dma.done.wait [#allocation3], 512  }
   0xb   :  { %352 = vsyncadd [#allocation3], 4294966784 }
   0xc   :  { %353 = dma.done.wait [#allocation5], 4096  }
   0xd   :  { %354 = vsyncadd [#allocation5], 4294963200  ;;  %v360_v0 = vmov 0   ;;  %vm95_vm0 = vcmask 1043456   ;;  %v89_v1 = vld [vmem:[#allocation2 + $0x18] sm:$0xff]  ;;  %v88_v2 = vld [vmem:[#allocation2 + $0x10] sm:$0xff] }
   0xe   :  { %272 = vset.pattern.permute.xlu0 %v360_v0  ;;  %135 = vmatpush.msra.mxu1 %v89_v1  ;;  %v90_v3 = vld [vmem:[%s462_s4] sm:$0xf]  ;;  %vm91_vm1 = vcmask 31744   ;;  %v87_v5 = vld [vmem:[#allocation2 + $0x8] sm:$0xff]  ;;  %v175_v8 = vld [vmem:[#allocation4 + $0x78] sm:$0xff]  ;;  %vm119_vm2 = vcmask 261120  }
   0xf   :  { %v83_v4 = vld [vmem:[%s459_s1] sm:$0xff]  ;;  %263 = vmatpush.msk.msra.mxu0 %vm95_vm0, %v90_v3  ;;  %v174_v9 = vld [vmem:[#allocation4 + $0x70] sm:$0xff]  ;;  %178 = vmatpush.msra.mxu2 %v175_v8  ;;  %v173_v12 = vld [vmem:[#allocation4 + $0x68] sm:$0xff]  ;;  %vm255_vm6 = vcmask 7168  }
  0x10   :  { %v84_v6 = vcvt.s32.f32 %v83_v4  ;;  %v85_v7 = vld [vmem:[%s460_s2] sm:$0xff]  ;;  %136 = vmatpush.msra.mxu1 %v88_v2  ;;  %v171_v14 = vld [vmem:[#allocation4 + $0x58] sm:$0xff]  ;;  %v170_v15 = vld [vmem:[#allocation4 + $0x50] sm:$0xff] }
  0x11   :  { %146 = vperm.xlu0 %272, %v85_v7   ;;  %v86_v10 = vld [vmem:[#allocation2] sm:$0xff]  ;;  %179 = vmatpush.msra.mxu2 %v174_v9  ;;  %v169_v16 = vld [vmem:[#allocation4 + $0x48] sm:$0xff]  ;;  %v167_v18 = vld [vmem:[#allocation4 + $0x38] sm:$0xff] }
  0x12   :  { %264 = vmatmul.msk.f32.vlgmr.msra.gmra.mxu0 %vm91_vm1, %v84_v6  ;;  %137 = vmatpush.msra.mxu1 %v87_v5  ;;  %v82_v11 = vld [vmem:[%s458_s0] sm:$0xff]  ;;  %v166_v19 = vld [vmem:[#allocation4 + $0x30] sm:$0xff]  ;;  %v165_v20 = vld [vmem:[#allocation4 + $0x28] sm:$0xff] }
  0x13   :  { %v172_v13 = vld [vmem:[#allocation4 + $0x60] sm:$0xff]  ;;  %180 = vmatpush.msra.mxu2 %v173_v12  ;;  %v163_v22 = vld [vmem:[#allocation4 + $0x18] sm:$0xff]  ;;  %v162_v23 = vld [vmem:[#allocation4 + $0x10] sm:$0xff] }
  0x14   :  { %138 = vmatpush.msra.mxu1 %v86_v10  ;;  %v168_v17 = vld [vmem:[#allocation4 + $0x40] sm:$0xff]  ;;  %v161_v24 = vld [vmem:[#allocation4 + $0x8] sm:$0xff]  ;;  %v216_v26 = vld [vmem:[#allocation6 + $0x78] sm:$0xff] }
  0x15   :  { %265 = vmatmul.msk.f32.vlgmr.msra.gmra.mxu1 %vm119_vm2, %v82_v11  ;;  %181 = vmatpush.msra.mxu2 %v172_v13  ;;  %v164_v21 = vld [vmem:[#allocation4 + $0x20] sm:$0xff]  ;;  %v215_v27 = vld [vmem:[#allocation6 + $0x70] sm:$0xff]  ;;  %v214_v28 = vld [vmem:[#allocation6 + $0x68] sm:$0xff] }
  0x16   :  { %v160_v25 = vld [vmem:[#allocation4] sm:$0xff]  ;;  %219 = vmatpush.msra.mxu3 %v216_v26  ;;  %v212_v30 = vld [vmem:[#allocation6 + $0x58] sm:$0xff]  ;;  %v211_v31 = vld [vmem:[#allocation6 + $0x50] sm:$0xff] }
  0x17   :  { %182 = vmatpush.msra.mxu2 %v171_v14  ;;  %v213_v29 = vld [vmem:[#allocation6 + $0x60] sm:$0xff]  ;;  %v210_v32 = vld [vmem:[#allocation6 + $0x48] sm:$0xff]  ;;  %v208_v34 = vld [vmem:[#allocation6 + $0x38] sm:$0xff] }
  0x18   :  { %220 = vmatpush.msra.mxu3 %v215_v27  ;;  %v209_v33 = vld [vmem:[#allocation6 + $0x40] sm:$0xff]  ;;  %v207_v35 = vld [vmem:[#allocation6 + $0x30] sm:$0xff]  ;;  %v206_v38 = vld [vmem:[#allocation6 + $0x28] sm:$0xff] }
  0x19   :  { %183 = vmatpush.msra.mxu2 %v170_v15  ;;  %v273_v36 = vld [vmem:[%s463_s5] ss:$0 sm:$0xff]  ;;  %v204_v43 = vld [vmem:[#allocation6 + $0x18] sm:$0xff]  ;;  %v203_v50 = vld [vmem:[#allocation6 + $0x10] sm:$0xff] }
  0x1a   :  { %221 = vmatpush.msra.mxu3 %v214_v28  ;;  %v205_v40 = vld [vmem:[#allocation6 + $0x20] sm:$0xff]  ;;  %v202_v51 = vld [vmem:[#allocation6 + $0x8] sm:$0xff] }
  0x1b   :  { %184 = vmatpush.msra.mxu2 %v169_v16  ;;  %v274_v45 = vld [vmem:[%s467_s9] ss:$0 sm:$0xff]  ;;  %v275_v53 = vld [vmem:[%s467_s9 + $0x1] ss:$0 sm:$0xff]  ;;  %v276_v58 = vld [vmem:[%s467_s9 + $0x2] ss:$0 sm:$0xff] }
  0x1c   :  { %222 = vmatpush.msra.mxu3 %v213_v29  ;;  %v201_v52 = vld [vmem:[#allocation6] sm:$0xff] }
  0x1d   :  { %185 = vmatpush.msra.mxu2 %v168_v17  ;;  %v277_v61 = vld [vmem:[%s466_s8] ss:$0 sm:$0xff]  ;;  %v278_v1 = vld [vmem:[%s467_s9 + $0x3] ss:$0 sm:$0xff] }
  0x1e   :  { %223 = vmatpush.msra.mxu3 %v212_v30 }
  0x1f   :  { %186 = vmatpush.msra.mxu2 %v167_v18 }
  0x20   :  { %224 = vmatpush.msra.mxu3 %v211_v31 }
  0x21   :  { %187 = vmatpush.msra.mxu2 %v166_v19 }
  0x22   :  { %225 = vmatpush.msra.mxu3 %v210_v32 }
  0x23   :  { %188 = vmatpush.msra.mxu2 %v165_v20 }
  0x24   :  { %226 = vmatpush.msra.mxu3 %v209_v33 }
  0x25   :  { %189 = vmatpush.msra.mxu2 %v164_v21 }
  0x26   :  { %227 = vmatpush.msra.mxu3 %v208_v34 }
  0x27   :  { %190 = vmatpush.msra.mxu2 %v163_v22 }
  0x28   :  { %228 = vmatpush.msra.mxu3 %v207_v35 }
  0x29   :  { %191 = vmatpush.msra.mxu2 %v162_v23 }
  0x2a   :  { %229 = vmatpush.msra.mxu3 %v206_v38 }
  0x2b   :  { %192 = vmatpush.msra.mxu2 %v161_v24 }
  0x2c   :  { %230 = vmatpush.msra.mxu3 %v205_v40 }
  0x2d   :  { %193 = vmatpush.msra.mxu2 %v160_v25 }
  0x2e   :  { %231 = vmatpush.msra.mxu3 %v204_v43 }
  0x30   :  { %232 = vmatpush.msra.mxu3 %v203_v50 }
  0x32   :  { %233 = vmatpush.msra.mxu3 %v202_v51 }
  0x34   :  { %234 = vmatpush.msra.mxu3 %v201_v52 }
  0x83   :  { %v147_v37 = vpop.permute.xlu0 %146 }
  0x84   :  { %v152_v41 = vmul.f32 %v273_v36, %v147_v37 }
  0x8f   :  { %v116_v39 = vpop.f32.mrf.mxu0 }
  0x92   :  { %v140_v42 = vpop.f32.mrf.mxu1 }
  0x93   :  { %v141_v44 = vadd.f32 %v140_v42, %v116_v39 }
  0x95   :  { %v153_v46 = vadd.f32 %v152_v41, %v141_v44 }
  0x97   :  { %v156_v47 = vadd.f32 %v274_v45, %v153_v46 }
  0x99   :  { %vm157_vm3 = vcmp.gt.f32.partialorder %v156_v47, 0.0  ;;  %v158_v48 = vmul.f32 0.3, %v156_v47 }
  0x9b   :  { %v159_v49 = vsel %vm157_vm3, %v156_v47, %v158_v48 }
  0x9c   :  { %194 = vmatmul.f32.vlgmr.msra.gmra.mxu2 %v159_v49 }
 0x11f   :  { %v195_v54 = vpop.f32.mrf.mxu2 }
 0x120   :  { %v196_v55 = vadd.f32 %v275_v53, %v195_v54 }
 0x122   :  { %vm198_vm4 = vcmp.gt.f32.partialorder %v196_v55, 0.0  ;;  %v199_v56 = vmul.f32 0.3, %v196_v55 }
 0x124   :  { %v200_v57 = vsel %vm198_vm4, %v196_v55, %v199_v56 }
 0x125   :  { %235 = vmatmul.f32.vlgmr.msra.gmra.mxu3 %v200_v57 }
 0x1a8   :  { %v236_v59 = vpop.f32.mrf.mxu3 }
 0x1a9   :  { %v237_v60 = vadd.f32 %v276_v58, %v236_v59 }
 0x1ab   :  { %v240_v62 = vmul.f32 0.3, %v237_v60  ;;  %vm239_vm5 = vcmp.gt.f32.partialorder %v237_v60, 0.0 }
 0x1ad   :  { %v241_v63 = vsel %vm239_vm5, %v237_v60, %v240_v62 }
 0x1ae   :  { %v246_v0 = vmul.f32 %v277_v61, %v241_v63 }
 0x1b0   :  { %247 = vadd.xlane.f32.xlu0 %v246_v0 }
 0x223   :  { %v248_v2 = vpop.xlane.xlu0 %247 }
 0x224   :  { %v251_v3 = vadd.f32 %v278_v1, %v248_v2 }
 0x226   :  { %vm252_vm7 = vcmp.gt.f32.partialorder %v251_v3, 0.0  ;;  %v253_v4 = vmul.f32 0.3, %v251_v3 }
 0x228   :  { %v254_v5 = vsel %vm252_vm7, %v251_v3, %v253_v4 }
 0x229   :  { %256 = vst.msk [vmem:[%s468_s10] sm:$0xff] %vm255_vm6, %v254_v5 }
 0x22a   :  { %261 = vsyncpa [#allocation3], 1 }
 0x22b   :  { %262 = vsyncpa [#allocation5], 1 }

</bundles_post_ra>
